<compile_context>
chip_gen: v7x
topology: tpu7x:2x2x1
jax: 0.10.0
libtpu: 0.0.40
codegen_flags: <defaults>
</compile_context>

<pallas_src>
import math

import jax
import jax.numpy as jnp
from jax.experimental import pallas as pl
from jax.experimental.pallas import tpu as pltpu


_SQRT_2_OVER_PI = math.sqrt(2.0 / math.pi)


def _gelu_tanh(x):
    # tanh-approx GELU (EUP-friendly); |err| <~ 1e-3 vs torch.nn.GELU() exact erf.
    return 0.5 * x * (1.0 + jnp.tanh(_SQRT_2_OVER_PI * (x + 0.044715 * (x * x * x))))


def _round_up(x, m):
    return ((x + m - 1) // m) * m


# ---------------------------------------------------------------------------
# Kernel: one (out-col-tile, row-tile) per grid step.
# ---------------------------------------------------------------------------

def bert_intermediate_kernel(x_ref, w_ref, b_ref, o_ref):
    # bf16 operands -> MXU-native matmul, f32 accumulation.
    acc = jnp.dot(x_ref[...], w_ref[...], preferred_element_type=jnp.float32)
    y = acc + b_ref[...]                       # bias stays f32
    # DeQuantStub / QuantStub are identity in float (eval) mode.
    o_ref[...] = _gelu_tanh(y).astype(o_ref.dtype)


# ---------------------------------------------------------------------------
# Wrapper: parameters padded/cast once; returns apply(x).
# ---------------------------------------------------------------------------

def make_bert_intermediate(w, b, *, tm=512, tn=None, out_dtype=jnp.bfloat16,
                           vmem_limit_bytes=48 * 1024 * 1024):
    """Build apply(x) computing GELU(x @ w + b).

    w: (H, I) weight (pre-transposed from torch's (I, H) nn.Linear layout).
    b: (I,) bias. Padding / bf16 casting happens once here, not per call.
    tn=None keeps the whole weight as one VMEM-resident column tile.
    """
    H, I = w.shape
    Hp = _round_up(H, 128)
    if tn is None:
        Ip = _round_up(I, 128)
        tn_eff = Ip                      # weight-resident: single column tile
    else:
        tn_eff = min(tn, _round_up(I, 128))
        Ip = _round_up(I, tn_eff)

    # Device-resident prepared parameters (hoisted out of the hot path).
    wp = jnp.pad(w.astype(jnp.float32), ((0, Hp - H), (0, Ip - I))).astype(jnp.bfloat16)
    bp = jnp.pad(b.astype(jnp.float32).reshape(1, I), ((0, 0), (0, Ip - I)))

    def apply(x):
        B, S, Hx = x.shape
        assert Hx == H
        M = B * S
        tm_eff = min(tm, _round_up(M, 8))
        Mp = _round_up(M, tm_eff)

        # bf16 activations (halves HBM/VMEM traffic); pad only when needed.
        x2 = x.reshape(M, H).astype(jnp.bfloat16)
        if Mp != M or Hp != H:
            x2 = jnp.pad(x2, ((0, Mp - M), (0, Hp - H)))

        # Column tiles outermost so each weight tile is DMA'd once total,
        # not once per row tile; both axes are independent ("parallel").
        grid = (Ip // tn_eff, Mp // tm_eff)

        out = pl.pallas_call(
            bert_intermediate_kernel,
            out_shape=jax.ShapeDtypeStruct((Mp, Ip), out_dtype),
            grid=grid,
            in_specs=[
                pl.BlockSpec((tm_eff, Hp), lambda j, i: (i, 0)),   # x  (bf16)
                pl.BlockSpec((Hp, tn_eff), lambda j, i: (0, j)),   # W  (bf16)
                pl.BlockSpec((1, tn_eff), lambda j, i: (0, j)),    # b  (f32)
            ],
            out_specs=pl.BlockSpec((tm_eff, tn_eff), lambda j, i: (i, j)),
            compiler_params=pltpu.CompilerParams(
                dimension_semantics=("parallel", "parallel"),
                vmem_limit_bytes=vmem_limit_bytes),
        )(x2, wp, bp)

        if Mp != M or Ip != I:
            out = out[:M, :I]
        return out.reshape(B, S, I)

    return apply


# TODO(synk): QuantStub/DeQuantStub are identity in float (eval) mode; the
# int8-quantized inference path of the module is not modeled.


# ---------------------------------------------------------------------------
# Deterministic example + run
# ---------------------------------------------------------------------------

if __name__ == "__main__":
    # Small BertIntermediate config: hidden=32, intermediate=64, hidden_act='gelu'.
    B, S, H, I = 2, 8, 32, 64

    key = jax.random.PRNGKey(0)
    kx, kw, kb = jax.random.split(key, 3)
    x = jax.random.normal(kx, (B, S, H), dtype=jnp.float32)
    w = (0.02 * jax.random.normal(kw, (H, I))).astype(jnp.float32)  # (in, out)
    b = (0.02 * jax.random.normal(kb, (I,))).astype(jnp.float32)

    apply_fn = jax.jit(make_bert_intermediate(w, b))
    out = jax.block_until_ready(apply_fn(x))

    # Plain-JAX f32 reference (exact erf GELU). bf16 operands/output and the
    # tanh-approx GELU give ~1e-3-level deviation, hence the tolerance.
    ref = jax.nn.gelu(x.reshape(-1, H) @ w + b, approximate=False).reshape(B, S, I)
    assert out.shape == (B, S, I) and out.dtype == jnp.bfloat16
    err = float(jnp.max(jnp.abs(out.astype(jnp.float32) - ref)))
    assert bool(jnp.allclose(out.astype(jnp.float32), ref, rtol=5e-2, atol=1e-2)), err
    print("KERNEL_OK")
</pallas_src>

<mosaic_0001>
module attributes {stable_mosaic.version = 11 : i64} {
  func.func @bert_intermediate_kernel(%arg0: i32, %arg1: i32, %arg2: memref<16x128xbf16, #tpu.memory_space<vmem>>, %arg3: memref<128x128xbf16, #tpu.memory_space<vmem>>, %arg4: memref<1x128xf32, #tpu.memory_space<vmem>>, %arg5: memref<16x128xbf16, #tpu.memory_space<vmem>>) attributes {dimension_semantics = [#tpu.dimension_semantics<parallel>, #tpu.dimension_semantics<parallel>], iteration_bounds = array<i64: 1, 1>, scalar_prefetch = 0 : i64, scratch_operands = 0 : i64, tpu.core_type = #tpu.core_type<tc>, window_params = [{transform_indices = @transform_0, window_bounds = array<i64: 16, 128>}, {transform_indices = @transform_1, window_bounds = array<i64: 128, 128>}, {transform_indices = @transform_2, window_bounds = array<i64: 1, 128>}, {transform_indices = @transform_3, window_bounds = array<i64: 16, 128>}]} {
    %c0 = arith.constant 0 : index
    %c0_0 = arith.constant 0 : index
    %0 = vector.load %arg2[%c0, %c0_0] : memref<16x128xbf16, #tpu.memory_space<vmem>>, vector<16x128xbf16>
    %c0_1 = arith.constant 0 : index
    %c0_2 = arith.constant 0 : index
    %1 = vector.load %arg3[%c0_1, %c0_2] : memref<128x128xbf16, #tpu.memory_space<vmem>>, vector<128x128xbf16>
    %cst = arith.constant dense<0.000000e+00> : vector<16x128xf32>
    %2 = tpu.matmul %0, %1, %cst {dimension_numbers = #tpu.dot_dimension_numbers<[1], [0], [0], [1], [0, 0, 1, 1], [], []>} : vector<16x128xbf16>, vector<128x128xbf16>, vector<16x128xf32> -> vector<16x128xf32>
    %c0_3 = arith.constant 0 : index
    %c0_4 = arith.constant 0 : index
    %3 = vector.load %arg4[%c0_3, %c0_4] : memref<1x128xf32, #tpu.memory_space<vmem>>, vector<1x128xf32>
    %4 = vector.broadcast %3 : vector<1x128xf32> to vector<16x128xf32>
    %5 = arith.addf %2, %4 : vector<16x128xf32>
    %cst_5 = arith.constant 5.000000e-01 : f32
    %6 = vector.broadcast %cst_5 : f32 to vector<16x128xf32>
    %7 = arith.mulf %6, %5 : vector<16x128xf32>
    %8 = arith.mulf %5, %5 : vector<16x128xf32>
    %9 = arith.mulf %8, %5 : vector<16x128xf32>
    %cst_6 = arith.constant 4.471500e-02 : f32
    %10 = vector.broadcast %cst_6 : f32 to vector<16x128xf32>
    %11 = arith.mulf %10, %9 : vector<16x128xf32>
    %12 = arith.addf %5, %11 : vector<16x128xf32>
    %cst_7 = arith.constant 0.797884583 : f32
    %13 = vector.broadcast %cst_7 : f32 to vector<16x128xf32>
    %14 = arith.mulf %13, %12 : vector<16x128xf32>
    %15 = math.tanh %14 : vector<16x128xf32>
    %cst_8 = arith.constant 1.000000e+00 : f32
    %16 = vector.broadcast %cst_8 : f32 to vector<16x128xf32>
    %17 = arith.addf %16, %15 : vector<16x128xf32>
    %18 = arith.mulf %7, %17 : vector<16x128xf32>
    %19 = arith.truncf %18 : vector<16x128xf32> to vector<16x128xbf16>
    %c0_9 = arith.constant 0 : index
    %c0_10 = arith.constant 0 : index
    %20 = vector.load %arg5[%c0_9, %c0_10] : memref<16x128xbf16, #tpu.memory_space<vmem>>, vector<16x128xbf16>
    tpu.vector_store %arg5[%c0_9, %c0_10], %19 {strides = array<i32>} : memref<16x128xbf16, #tpu.memory_space<vmem>>, vector<16x128xbf16>,
    return
  }
  func.func @transform_0(%arg0: i32, %arg1: i32) -> (i32, i32) {
    %c0_i32 = arith.constant 0 : i32
    %c0_i32_0 = arith.constant 0 : i32
    return %arg1, %c0_i32 : i32, i32
  }
  func.func @transform_1(%arg0: i32, %arg1: i32) -> (i32, i32) {
    %c0_i32 = arith.constant 0 : i32
    %c0_i32_0 = arith.constant 0 : i32
    return %c0_i32, %arg0 : i32, i32
  }
  func.func @transform_2(%arg0: i32, %arg1: i32) -> (i32, i32) {
    %c0_i32 = arith.constant 0 : i32
    %c0_i32_0 = arith.constant 0 : i32
    return %c0_i32, %arg0 : i32, i32
  }
  func.func @transform_3(%arg0: i32, %arg1: i32) -> (i32, i32) {
    %c0_i32 = arith.constant 0 : i32
    return %arg1, %arg0 : i32, i32
  }
}

</mosaic_0001>

<bundles_post_ra>
// kernel: apply.1
= control target key start
LH: loop header
LB: loop body
LE: loop exit
PB: predicated region body
PF: predicated region fallthrough
CT: control target
= control target key end

     0   :  { %8 = vsyncpa [#allocation3], 0  ;;  %s272_s12 = smov [#allocation2]   ;;  %s318_s0 = inlined_call_operand.vmem [shape: bf16[16,128], index: 0, kind: input, shape index: {}]   ;;  %s319_s1 = inlined_call_operand.hbm [shape: bf16[128,128], index: 1, kind: input, shape index: {}]   ;;  %s320_s2 = inlined_call_operand.vmem [shape: f32[1,128], index: 2, kind: input, shape index: {}]   ;;  %s321_s3 = inlined_call_operand.vmem [shape: bf16[16,128], index: 3, kind: output, shape index: {}]  }
   0x1   :  { %s16_s13 = sshll.u32 %s272_s12, 4  ;;  %s248_s16 = scalar_lea.hbm %s319_s1, 1024  ;;  %s17_s13 = int_to_ptr.vmem [resolvable:$true] %s16_s13 }
   0x2   :  { %p249_p0 = scmp.ne.s32.totalorder %s319_s1, %s248_s16  ;;  %p252_p1 = scmp.lt.u32.totalorder %s248_s16, %s319_s1 }
   0x4   :  { %p254_p2 = pnand %p252_p1, %p249_p0 }
   0x6   :  { %257 = shalt.err (!%p254_p2)
}
   0x7   :  { %s258_s21 = scalar_lea.vmem %s17_s13, 1024  ;;  %p263_p4 = scmp.lt.s32.totalorder %s17_s13, %s17_s13 }
   0x8   :  { %p259_p3 = scmp.ne.s32.totalorder %s17_s13, %s258_s21  ;;  %p264_p5 = scmp.lt.s32.totalorder %s258_s21, %s258_s21 }
   0xa   :  { %p265_p6 = por %p264_p5, %p263_p4 }
   0xc   :  { %p266_p7 = pnand %p265_p6, %p259_p3 }
   0xe   :  { %269 = shalt.err (!%p266_p7)
}
   0xf   :  { %s273_s22 = smov 64   ;;  %s274_s23 = smov 4  }
  0x10   :  { %22 = dma.hbm_to_vmem [thread:$0]  %s319_s1, 1024, %s17_s13, [#allocation3], %s273_s22, %s273_s22, %s274_s23  }
  0x11   :  { %270 = dma.done.wait [#allocation3], 1024  }
  0x12   :  { %271 = vsyncadd [#allocation3], 4294966272  ;;  %v275_v0 = vmov 0.0   ;;  %vm276_vm0 = vmmov 0   ;;  %v235_v1 = vld [vmem:[#allocation2] sm:$0xff]   ;;  %v236_v2 = vld [vmem:[#allocation2 + $0x8] sm:$0xff]  }
  0x13   :  { %210 = vmatprep.subr.bf16.mxu0 %v275_v0  ;;  %226 = vmatprep.mubr.msk.bf16.mxu0 %vm276_vm0, %v275_v0  ;;  %v237_v3 = vld [vmem:[#allocation2 + $0x10] sm:$0xff]   ;;  %v238_v4 = vld [vmem:[#allocation2 + $0x18] sm:$0xff]   ;;  %v239_v5 = vld [vmem:[#allocation2 + $0x20] sm:$0xff]  }
  0x14   :  { %211 = vmatpush3.bf16.msra.mxu0 %v235_v1  ;;  %v240_v6 = vld [vmem:[#allocation2 + $0x28] sm:$0xff]   ;;  %v241_v7 = vld [vmem:[#allocation2 + $0x30] sm:$0xff]   ;;  %v242_v8 = vld [vmem:[#allocation2 + $0x38] sm:$0xff]  }
  0x15   :  { %212 = vmatprep.subr.bf16.mxu0 %v275_v0  ;;  %v243_v9 = vld [vmem:[%s318_s0] sm:$0xff]  }
  0x16   :  { %v182_v10 = vld [vmem:[%s320_s2] ss:$0 sm:$0xff] }
  0x18   :  { %213 = vmatpush3.bf16.msra.mxu0 %v236_v2 }
  0x19   :  { %214 = vmatprep.subr.bf16.mxu0 %v275_v0 }
  0x1c   :  { %215 = vmatpush3.bf16.msra.mxu0 %v237_v3 }
  0x1d   :  { %216 = vmatprep.subr.bf16.mxu0 %v275_v0 }
  0x20   :  { %217 = vmatpush3.bf16.msra.mxu0 %v238_v4 }
  0x21   :  { %218 = vmatprep.subr.bf16.mxu0 %v275_v0 }
  0x24   :  { %219 = vmatpush3.bf16.msra.mxu0 %v239_v5 }
  0x25   :  { %220 = vmatprep.subr.bf16.mxu0 %v275_v0 }
  0x28   :  { %221 = vmatpush3.bf16.msra.mxu0 %v240_v6 }
  0x29   :  { %222 = vmatprep.subr.bf16.mxu0 %v275_v0 }
  0x2c   :  { %223 = vmatpush3.bf16.msra.mxu0 %v241_v7 }
  0x2d   :  { %224 = vmatprep.subr.bf16.mxu0 %v275_v0 }
  0x30   :  { %225 = vmatpush3.bf16.msra.mxu0 %v242_v8 }
  0x33   :  { %227 = vmatmul.mubr.bf16.vlgmr.msra.gmra.mrb[0].mxu0 %v243_v9 }
 0x106   :  { %v142_v11 = vpop.f32.mrb[0].mxu0 }
 0x107   :  { %v143_v12 = vadd.f32 %v182_v10, %v142_v11  ;;  %v228_v13 = vpop.f32.mrb[1].mxu0 }
 0x108   :  { %v145_v14 = vpop.f32.mrb[2].mxu0 }
 0x109   :  { %v151_v15 = vmul.f32 %v143_v12, %v143_v12  ;;  %v146_v16 = vadd.f32 %v182_v10, %v145_v14  ;;  %v229_v17 = vpop.f32.mrb[3].mxu0  ;;  %v149_v30 = vmul.f32 0.5, %v143_v12 }
 0x10b   :  { %v153_v18 = vmul.f32 %v151_v15, %v143_v12  ;;  %v152_v19 = vmul.f32 %v146_v16, %v146_v16  ;;  %v150_v31 = vmul.f32 0.5, %v146_v16 }
 0x10d   :  { %v155_v20 = vmul.f32 0.044715, %v153_v18  ;;  %v154_v21 = vmul.f32 %v152_v19, %v146_v16 }
 0x10f   :  { %v157_v22 = vadd.f32 %v155_v20, %v143_v12  ;;  %v156_v23 = vmul.f32 0.044715, %v154_v21 }
 0x111   :  { %v159_v24 = vmul.f32 0.7978846, %v157_v22  ;;  %v158_v25 = vadd.f32 %v156_v23, %v146_v16 }
 0x113   :  { %244 = vtanh.f32 %v159_v24  ;;  %v160_v26 = vmul.f32 0.7978846, %v158_v25 }
 0x115   :  { %246 = vtanh.f32 %v160_v26 }
 0x11d   :  { %v245_v27 = vpop.eup %244 }
 0x11e   :  { %v163_v28 = vadd.f32 1.0, %v245_v27 }
 0x11f   :  { %v247_v29 = vpop.eup %246 }
 0x120   :  { %v164_v32 = vadd.f32 1.0, %v247_v29  ;;  %v165_v33 = vmul.f32 %v163_v28, %v149_v30 }
 0x122   :  { %v166_v34 = vmul.f32 %v164_v32, %v150_v31 }
 0x124   :  { %v199_v35 = vpack.c.bf16 %v166_v34, %v165_v33 }
 0x126   :  { %200 = vst [vmem:[%s321_s3] sm:$0xff] %v199_v35  }
 0x127   :  { %181 = vsyncpa [#allocation3], 1 }

</bundles_post_ra>
